<compile_context>
chip_gen: v7x
topology: tpu7x:2x2x1
jax: 0.10.0
libtpu: 0.0.40
codegen_flags: <defaults>
</compile_context>

<pallas_src>
import functools

import jax
import jax.numpy as jnp
from jax.experimental import pallas as pl
from jax.experimental.pallas import tpu as pltpu


def _round_up(x, m):
    return (x + m - 1) // m * m


def _cp_kernel(z_ref, u_ref, c_ref, cb_ref, o_ref, *, degree, kp):
    # z_ref : (tm, d)            tile of flattened inputs (native dtype)
    # u_ref : (d, degree*kp)     all U_i fused along the output-column axis
    # c_ref : (kp, op)           layer_C weight (transposed, zero-padded)
    # cb_ref: (1, op)            layer_C bias (zero-padded)
    # o_ref : (tm, op)           output tile (lane-dense, op % 128 == 0)
    z = z_ref[...]

    # One MXU call covering every degree; f32 accumulation.
    p = jnp.dot(z, u_ref[...], preferred_element_type=jnp.float32)  # (tm, deg*kp)

    # out = U1(z);  out = U_i(z) * out + out  for i = 2..degree (static unroll).
    out = p[:, :kp]
    for i in range(1, degree):
        ui = p[:, i * kp:(i + 1) * kp]     # lane-aligned (tm, kp) slice
        out = ui * out + out               # f32 VPU

    # x = layer_C(out)
    x = jnp.dot(out, c_ref[...], preferred_element_type=jnp.float32)
    x = x + cb_ref[...]                    # (1, op) broadcasts over rows
    o_ref[...] = x.astype(o_ref.dtype)


def cp_forward(z, u_stack, c_w, c_b, *, tile_rows=256, lane=128):
    """z: (..., d) -> (..., o) using the Pallas CP kernel.

    u_stack: (degree, d, k)   U_i weights pre-transposed (PyTorch weight is (k, d))
    c_w    : (k, o)           layer_C weight pre-transposed
    c_b    : (o,)             layer_C bias
    """
    assert tile_rows % 8 == 0, "tile_rows must be a multiple of 8 (sublane)"
    degree, d, k = u_stack.shape
    o = c_w.shape[1]
    orig_shape = z.shape[:-1]

    z2 = z.reshape(-1, d)
    n = z2.shape[0]

    # Pad rows to a multiple of tile_rows (padded rows are sliced off after).
    n_pad = _round_up(max(n, 1), tile_rows)
    if n_pad != n:
        z2 = jnp.pad(z2, ((0, n_pad - n), (0, 0)))

    # Pad rank / output dims to 128-lane multiples (semantics-preserving zeros).
    kp = _round_up(k, lane)
    op = _round_up(o, lane)
    u_pad = jnp.pad(u_stack, ((0, 0), (0, 0), (0, kp - k)))            # (deg, d, kp)
    u_all = jnp.transpose(u_pad, (1, 0, 2)).reshape(d, degree * kp)    # (d, deg*kp)
    c_w_pad = jnp.pad(c_w, ((0, kp - k), (0, op - o)))                 # (kp, op)
    c_b_pad = jnp.pad(c_b.reshape(1, o), ((0, 0), (0, op - o)))        # (1, op)

    grid = (n_pad // tile_rows,)

    # Advisory cost hint for XLA scheduling around the custom call.
    itemsize = jnp.dtype(z2.dtype).itemsize
    w_itemsize = jnp.dtype(u_all.dtype).itemsize
    flops = 2 * n_pad * d * (degree * kp) + 2 * n_pad * kp * op
    bytes_accessed = (
        n_pad * d * itemsize          # z in
        + n_pad * op * itemsize       # x out
        + (u_all.size + c_w_pad.size + c_b_pad.size) * w_itemsize
    )
    cost = pl.CostEstimate(flops=flops, transcendentals=0,
                           bytes_accessed=bytes_accessed)

    kernel = functools.partial(_cp_kernel, degree=degree, kp=kp)

    out = pl.pallas_call(
        kernel,
        out_shape=jax.ShapeDtypeStruct((n_pad, op), z.dtype),
        grid_spec=pltpu.PrefetchScalarGridSpec(
            num_scalar_prefetch=0,
            grid=grid,
            in_specs=[
                pl.BlockSpec((tile_rows, d), lambda i: (i, 0)),
                pl.BlockSpec((d, degree * kp), lambda i: (0, 0)),
                pl.BlockSpec((kp, op), lambda i: (0, 0)),
                pl.BlockSpec((1, op), lambda i: (0, 0)),
            ],
            out_specs=pl.BlockSpec((tile_rows, op), lambda i: (i, 0)),
        ),
        compiler_params=pltpu.CompilerParams(
            dimension_semantics=("parallel",),
        ),
        cost_estimate=cost,
    )(z2, u_all, c_w_pad, c_b_pad)

    return out[:n, :o].reshape(*orig_shape, o)


def cp_reference(z, u_stack, c_w, c_b):
    """Pure-JAX reference mirroring the PyTorch forward."""
    degree, d, _ = u_stack.shape
    orig_shape = z.shape[:-1]
    z2 = z.reshape(-1, d).astype(jnp.float32)
    out = z2 @ u_stack[0].astype(jnp.float32)
    for i in range(1, degree):
        out = (z2 @ u_stack[i].astype(jnp.float32)) * out + out
    x = out @ c_w.astype(jnp.float32) + c_b.astype(jnp.float32)
    return x.reshape(*orig_shape, c_w.shape[1]).astype(z.dtype)


if __name__ == "__main__":
    # Module hyperparameters (CP(degree, d, k, o)).
    degree = 3
    d = 32      # input_dimension
    k = 32      # rank
    o = 16      # output_dimension
    batch, seq = 2, 256   # N = 512 rows -> 2 grid steps at tile_rows=256

    key = jax.random.PRNGKey(0)
    k_z, k_u, k_cw, k_cb = jax.random.split(key, 4)

    # Deterministic parameter init mimicking nn.Linear's uniform(-1/sqrt(fan_in), ...)
    u_bound = 1.0 / jnp.sqrt(d)
    c_bound = 1.0 / jnp.sqrt(k)
    # U_i weights stored pre-transposed: (degree, d, k)
    u_stack = jax.random.uniform(k_u, (degree, d, k), jnp.float32,
                                 minval=-u_bound, maxval=u_bound)
    # layer_C weight pre-transposed: (k, o); bias: (o,)
    c_w = jax.random.uniform(k_cw, (k, o), jnp.float32,
                             minval=-c_bound, maxval=c_bound)
    c_b = jax.random.uniform(k_cb, (o,), jnp.float32,
                             minval=-c_bound, maxval=c_bound)

    # Example input: (batch, seq, d)
    z = jax.random.normal(k_z, (batch, seq, d), jnp.float32)

    y = cp_forward(z, u_stack, c_w, c_b, tile_rows=256)
    y = jax.block_until_ready(y)

    y_ref = cp_reference(z, u_stack, c_w, c_b)
    assert y.shape == (batch, seq, o)
    assert jnp.allclose(y, y_ref, atol=1e-5, rtol=1e-5), "mismatch vs reference"

    print("KERNEL_OK")
</pallas_src>

<mosaic_0001>
module attributes {stable_mosaic.version = 11 : i64} {
  func.func @_cp_kernel(%arg0: i32, %arg1: memref<256x32xf32, #tpu.memory_space<vmem>>, %arg2: memref<32x384xf32, #tpu.memory_space<vmem>>, %arg3: memref<128x128xf32, #tpu.memory_space<vmem>>, %arg4: memref<1x128xf32, #tpu.memory_space<vmem>>, %arg5: memref<256x128xf32, #tpu.memory_space<vmem>>) attributes {dimension_semantics = [#tpu.dimension_semantics<parallel>], iteration_bounds = array<i64: 2>, scalar_prefetch = 0 : i64, scratch_operands = 0 : i64, tpu.core_type = #tpu.core_type<tc>, window_params = [{transform_indices = @transform_0, window_bounds = array<i64: 256, 32>}, {pipeline_mode = #tpu.pipeline_mode<synchronous>, transform_indices = @transform_1, window_bounds = array<i64: 32, 384>}, {pipeline_mode = #tpu.pipeline_mode<synchronous>, transform_indices = @transform_2, window_bounds = array<i64: 128, 128>}, {pipeline_mode = #tpu.pipeline_mode<synchronous>, transform_indices = @transform_3, window_bounds = array<i64: 1, 128>}, {transform_indices = @transform_4, window_bounds = array<i64: 256, 128>}]} {
    %c0 = arith.constant 0 : index
    %c0_0 = arith.constant 0 : index
    %0 = vector.load %arg1[%c0, %c0_0] : memref<256x32xf32, #tpu.memory_space<vmem>>, vector<256x32xf32>
    %c0_1 = arith.constant 0 : index
    %c0_2 = arith.constant 0 : index
    %1 = vector.load %arg2[%c0_1, %c0_2] : memref<32x384xf32, #tpu.memory_space<vmem>>, vector<32x384xf32>
    %cst = arith.constant dense<0.000000e+00> : vector<256x384xf32>
    %2 = tpu.matmul %0, %1, %cst {dimension_numbers = #tpu.dot_dimension_numbers<[1], [0], [0], [1], [0, 0, 1, 1], [], []>} : vector<256x32xf32>, vector<32x384xf32>, vector<256x384xf32> -> vector<256x384xf32>
    %3 = vector.extract_strided_slice %2 {offsets = [0, 0], sizes = [256, 128], strides = [1, 1]} : vector<256x384xf32> to vector<256x128xf32>
    %4 = vector.extract_strided_slice %2 {offsets = [0, 128], sizes = [256, 128], strides = [1, 1]} : vector<256x384xf32> to vector<256x128xf32>
    %5 = arith.mulf %4, %3 : vector<256x128xf32>
    %6 = arith.addf %5, %3 : vector<256x128xf32>
    %7 = vector.extract_strided_slice %2 {offsets = [0, 256], sizes = [256, 128], strides = [1, 1]} : vector<256x384xf32> to vector<256x128xf32>
    %8 = arith.mulf %7, %6 : vector<256x128xf32>
    %9 = arith.addf %8, %6 : vector<256x128xf32>
    %c0_3 = arith.constant 0 : index
    %c0_4 = arith.constant 0 : index
    %10 = vector.load %arg3[%c0_3, %c0_4] : memref<128x128xf32, #tpu.memory_space<vmem>>, vector<128x128xf32>
    %cst_5 = arith.constant dense<0.000000e+00> : vector<256x128xf32>
    %11 = tpu.matmul %9, %10, %cst_5 {dimension_numbers = #tpu.dot_dimension_numbers<[1], [0], [0], [1], [0, 0, 1, 1], [], []>} : vector<256x128xf32>, vector<128x128xf32>, vector<256x128xf32> -> vector<256x128xf32>
    %c0_6 = arith.constant 0 : index
    %c0_7 = arith.constant 0 : index
    %12 = vector.load %arg4[%c0_6, %c0_7] : memref<1x128xf32, #tpu.memory_space<vmem>>, vector<1x128xf32>
    %13 = vector.broadcast %12 : vector<1x128xf32> to vector<256x128xf32>
    %14 = arith.addf %11, %13 : vector<256x128xf32>
    %c0_8 = arith.constant 0 : index
    %c0_9 = arith.constant 0 : index
    %15 = vector.load %arg5[%c0_8, %c0_9] : memref<256x128xf32, #tpu.memory_space<vmem>>, vector<256x128xf32>
    tpu.vector_store %arg5[%c0_8, %c0_9], %14 {strides = array<i32>} : memref<256x128xf32, #tpu.memory_space<vmem>>, vector<256x128xf32>,
    return
  }
  func.func @transform_0(%arg0: i32) -> (i32, i32) {
    %c0_i32 = arith.constant 0 : i32
    %c0_i32_0 = arith.constant 0 : i32
    return %arg0, %c0_i32 : i32, i32
  }
  func.func @transform_1(%arg0: i32) -> (i32, i32) {
    %c0_i32 = arith.constant 0 : i32
    %c0_i32_0 = arith.constant 0 : i32
    %c0_i32_1 = arith.constant 0 : i32
    return %c0_i32, %c0_i32_0 : i32, i32
  }
  func.func @transform_2(%arg0: i32) -> (i32, i32) {
    %c0_i32 = arith.constant 0 : i32
    %c0_i32_0 = arith.constant 0 : i32
    %c0_i32_1 = arith.constant 0 : i32
    return %c0_i32, %c0_i32_0 : i32, i32
  }
  func.func @transform_3(%arg0: i32) -> (i32, i32) {
    %c0_i32 = arith.constant 0 : i32
    %c0_i32_0 = arith.constant 0 : i32
    %c0_i32_1 = arith.constant 0 : i32
    return %c0_i32, %c0_i32_0 : i32, i32
  }
  func.func @transform_4(%arg0: i32) -> (i32, i32) {
    %c0_i32 = arith.constant 0 : i32
    %c0_i32_0 = arith.constant 0 : i32
    return %arg0, %c0_i32 : i32, i32
  }
}

</mosaic_0001>

<bundles_post_ra>
// kernel: tpu_custom_call.1
= control target key start
LH: loop header
LB: loop body
LE: loop exit
PB: predicated region body
PF: predicated region fallthrough
CT: control target
= control target key end

     0   :  { %9 = vsyncpa [#allocation3], 0  ;;  %s2236_s0 = inlined_call_operand.vmem [shape: f32[512,32], index: 0, kind: input, shape index: {}]   ;;  %s2237_s1 = inlined_call_operand.vmem [shape: f32[32,384], index: 1, kind: input, shape index: {}]   ;;  %s2238_s2 = inlined_call_operand.vmem [shape: f32[128,128], index: 2, kind: input, shape index: {}]   ;;  %s2239_s3 = inlined_call_operand.vmem [shape: f32[1,128], index: 3, kind: input, shape index: {}]   ;;  %s2240_s4 = inlined_call_operand.hbm [shape: f32[512,128], index: 4, kind: output, shape index: {}]  }
   0x1   :  { %11 = vsyncpa [#allocation3 + $0x1], 0  ;;  %s1787_s15 = smov 0   ;;  %s1789_s16 = smov 0  }
   0x2   :  { %s1791_s17 = smov 0   ;;  %s1793_s18 = smov 0  }
   0x3 LB: > { %s1808_s19 = sadd.s32 4294967295, %s1756_s18   ;;  %s1306_s20 = sadd.s32 4294967294, %s1756_s18   ;;  %s1756_s18 = sphi %s1793_s18, %s2246_s18   ;;  %s1752_s17 = sphi %s1791_s17, %s2245_s17   ;;  %s1748_s16 = sphi %s1789_s16, %s2244_s16   ;;  %s1744_s15 = sphi %s1787_s15, %s2243_s15  }
   0x4   : > { %s1812_s21 = sadd.s32 1, %s1756_s18   ;;  %s113_s22 = sadd.s32 1, %s1752_s17 }
   0x5   : > { %s110_s23 = ssub.s32 %s1756_s18, %s1812_s21  ;;  %p123_p0 = scmp.ne.s32.totalorder %s1752_s17, %s1748_s16 }
   0x6   : > { %p111_p1 = scmp.eq.s32.totalorder %s110_s23, 0  ;;  %p124_p2 = scmp.eq.s32.totalorder %s1808_s19, 1 }
   0x7   : > { %p129_p3 = scmp.ne.s32.totalorder %s1748_s16, %s1744_s15  ;;  %p130_p4 = scmp.eq.s32.totalorder %s1306_s20, 1 }
   0x8   : > { %s1823_s24 = scalar_select %p111_p1, %s1752_s17, %s113_s22  }
   0x9   : > { %p1825_p5 = por %p124_p2, %p123_p0  ;;  %p1829_p6 = por %p130_p4, %p129_p3 }
   0xa   : > { %p1309_p7 = scmp.ge.s32.totalorder %s1756_s18, 1  ;;  %p166_p8 = scmp.lt.s32.totalorder %s1756_s18, 3 }
   0xc   : > { %p167_p9 = pnand %p1309_p7, %p166_p8 }
   0xd   : > { %v232_v0 = vld [vmem:[%s2237_s1 + $0x8] sm:$0xff] (!%p167_p9)  ;;  %v235_v1 = vld [vmem:[%s2237_s1 + $0x20] sm:$0xff] (!%p167_p9)  ;;  %s1311_s7 = sshll.u32 (!%p167_p9), %s1808_s19, 5  ;;  %v234_v4 = vld [vmem:[%s2237_s1 + $0x18] sm:$0xff] (!%p167_p9)  ;;  %v1758_v7 = vmov (!%p167_p9), 0.0   ;;  %vm243_vm0 = vcmask (!%p167_p9), 261120  }
   0xe   : > { %170 = sbr.rel (%p167_p9) target bundleno = 600 (0x258), region = 36  ;;  %v231_v2 = vld [vmem:[%s2237_s1] sm:$0xff] (!%p167_p9)  ;;  %v1604_v3 = vpack.c.bf16 (!%p167_p9), %v235_v1, %v232_v0  ;;  %v238_v5 = vld [vmem:[%s2237_s1 + $0x38] sm:$0xff] (!%p167_p9)  ;;  %v241_v6 = vld [vmem:[%s2237_s1 + $0x50] sm:$0xff] (!%p167_p9)  ;;  %404 = vmatprep.mubr.f32.mxu0 (!%p167_p9), %v1758_v7  ;;  %p193_p10 = scmp.lt.s32.totalorder (!%p167_p9), %s1311_s7, 63 }
   0xf   : > { %v1606_v8 = vpack.c.bf16 (!%p167_p9), %v234_v4, %v231_v2  ;;  %v1608_v9 = vpack.c.bf16 (!%p167_p9), %v241_v6, %v238_v5  ;;  %v233_v10 = vld [vmem:[%s2237_s1 + $0x10] sm:$0xff] (!%p167_p9)  ;;  %v236_v11 = vld [vmem:[%s2237_s1 + $0x28] sm:$0xff] (!%p167_p9)  ;;  %v239_v15 = vld [vmem:[%s2237_s1 + $0x40] sm:$0xff] (!%p167_p9)  ;;  %s189_s12 = sand.u32 (!%p167_p9), 1, %s1748_s16   ;;  %s1759_s5 = smov (!%p167_p9), [#allocation2]  }
  0x10   : > { %v237_v12 = vld [vmem:[%s2237_s1 + $0x30] sm:$0xff] (!%p167_p9)  ;;  %1605 = vmatprep.subr.bf16.mxu0 (!%p167_p9), %v1604_v3  ;;  %v1612_v13 = vpack.c.bf16 (!%p167_p9), %v236_v11, %v233_v10  ;;  %v240_v14 = vld [vmem:[%s2237_s1 + $0x48] sm:$0xff] (!%p167_p9)  ;;  %v242_v16 = vld [vmem:[%s2237_s1 + $0x58] sm:$0xff] (!%p167_p9)  ;;  %s1698_s6 = sshll.u32 (!%p167_p9), %s1759_s5, 4  ;;  %s1699_s6 = int_to_ptr.vmem [resolvable:$false] %s1698_s6 }
  0x11   : > { %1607 = vmatpush1.bf16.msra.mxu0 (!%p167_p9), %v1606_v8  ;;  %v1610_v17 = vpack.c.bf16 (!%p167_p9), %v240_v14, %v237_v12  ;;  %v1616_v18 = vpack.c.bf16 (!%p167_p9), %v242_v16, %v239_v15  ;;  %v950_v25 = vld [vmem:[%s2238_s2] sm:$0xff] (!%p167_p9)  ;;  %v951_v26 = vld [vmem:[%s2238_s2 + $0x8] sm:$0xff] (!%p167_p9)  ;;  %v952_v27 = vld [vmem:[%s2238_s2 + $0x10] sm:$0xff] (!%p167_p9)  ;;  %s1700_s8 = scalar_lea.vmem (!%p167_p9), %s1699_s6, 8192 }
  0x12   : > { %1609 = vmatprep.subr.bf16.mxu0 (!%p167_p9), %v1608_v9  ;;  %1613 = vmatprep.subr.bf16.mxu1 (!%p167_p9), %v1612_v13  ;;  %v953_v28 = vld [vmem:[%s2238_s2 + $0x18] sm:$0xff] (!%p167_p9)  ;;  %v1620_v29 = vpack.c.bf16 (!%p167_p9), %v951_v26, %v950_v25  ;;  %v954_v31 = vld [vmem:[%s2238_s2 + $0x20] sm:$0xff] (!%p167_p9)  ;;  %v955_v32 = vld [vmem:[%s2238_s2 + $0x28] sm:$0xff] (!%p167_p9) }
  0x13   : > { %1615 = vmatpush3.bf16.msra.mxu1 (!%p167_p9), %v1612_v13  ;;  %v1624_v30 = vpack.c.bf16 (!%p167_p9), %v953_v28, %v952_v27  ;;  %v1628_v35 = vpack.c.bf16 (!%p167_p9), %v955_v32, %v954_v31  ;;  %v956_v36 = vld [vmem:[%s2238_s2 + $0x30] sm:$0xff] (!%p167_p9)  ;;  %v957_v37 = vld [vmem:[%s2238_s2 + $0x38] sm:$0xff] (!%p167_p9)  ;;  %v958_v41 = vld [vmem:[%s2238_s2 + $0x40] sm:$0xff] (!%p167_p9) }
  0x14   : > { %1617 = vmatprep.subr.bf16.mxu1 (!%p167_p9), %v1616_v18  ;;  %v1632_v40 = vpack.c.bf16 (!%p167_p9), %v957_v37, %v956_v36  ;;  %v959_v42 = vld [vmem:[%s2238_s2 + $0x48] sm:$0xff] (!%p167_p9)  ;;  %v960_v2 = vld [vmem:[%s2238_s2 + $0x50] sm:$0xff] (!%p167_p9)  ;;  %v961_v3 = vld [vmem:[%s2238_s2 + $0x58] sm:$0xff] (!%p167_p9) }
  0x15   : > { %s2248_s7 = smov (!%p193_p10, %s1311_s7), 63  ;;  %1611 = vmatpush1.bf16.msra.mxu0 %v1610_v17  ;;  %v1636_v45 = vpack.c.bf16 %v959_v42, %v958_v41  ;;  %v1640_v4 = vpack.c.bf16 %v961_v3, %v960_v2  ;;  %v962_v5 = vld [vmem:[%s2238_s2 + $0x60] sm:$0xff]  ;;  %v963_v6 = vld [vmem:[%s2238_s2 + $0x68] sm:$0xff]  ;;  %v964_v9 = vld [vmem:[%s2238_s2 + $0x70] sm:$0xff] }
  0x16   : > { %s1312_s10 = sshll.u32 %s2248_s7, 3  ;;  %v1644_v8 = vpack.c.bf16 %v963_v6, %v962_v5  ;;  %v965_v10 = vld [vmem:[%s2238_s2 + $0x78] sm:$0xff]  ;;  %s1310_s7 = sshll.u32 %s189_s12, 8 }
  0x17   : > { %s1876_s13 = scalar_lea.vmem %s2236_s0, %s1312_s10  ;;  %1619 = vmatpush3.bf16.msra.mxu1 %v1616_v18  ;;  %v1648_v11 = vpack.c.bf16 %v965_v10, %v964_v9  ;;  %s2120_s22 = scalar_lea.vmem [#allocation2], %s1310_s7 }
  0x18   : > { %v199_v19 = vld [vmem:[%s1876_s13] sm:$0xff]  ;;  %v200_v20 = vld [vmem:[%s1876_s13 + $0x8] sm:$0xff]  ;;  %v201_v21 = vld [vmem:[%s1876_s13 + $0x10] sm:$0xff]  ;;  %1621 = vmatprep.subr.bf16.mxu1 %v1620_v29  ;;  %s1244_s23 = sshll.u32 %s2120_s22, 4  ;;  %s2188_s23 = int_to_ptr.vmem [resolvable:$true] %s1244_s23 }
  0x19   : > { %1476 = vmatprep.mubr.msk.f32.mxu1 %vm243_vm0, %v199_v19  ;;  %1313 = vmatmul.mubr.msk.f32.vlgmr.msra.gmra.mrb[0].mxu0 %vm243_vm0, %v199_v19  ;;  %v202_v22 = vld [vmem:[%s1876_s13 + $0x18] sm:$0xff]  ;;  %v203_v23 = vld [vmem:[%s1876_s13 + $0x20] sm:$0xff]  ;;  %v204_v24 = vld [vmem:[%s1876_s13 + $0x28] sm:$0xff]  ;;  %s1694_s30 = scalar_lea.vmem %s2188_s23, 4096  ;;  %p1701_p0 = scmp.lt.s32.totalorder %s2188_s23, %s1699_s6 }
  0x1a   : > { %410 = vmatprep.mubr.f32.mxu0 %v1758_v7  ;;  %1477 = vmatmul.mubr.msk.f32.vlgmr.msra.gmra.mrb[0].mxu1 %vm243_vm0, %v200_v20  ;;  %v205_v33 = vld [vmem:[%s1876_s13 + $0x30] sm:$0xff]  ;;  %v206_v34 = vld [vmem:[%s1876_s13 + $0x38] sm:$0xff]  ;;  %v207_v38 = vld [vmem:[%s1876_s13 + $0x40] sm:$0xff]  ;;  %p1695_p11 = scmp.ne.s32.totalorder %s2188_s23, %s1694_s30  ;;  %p1702_p1 = scmp.lt.s32.totalorder %s1700_s8, %s1694_s30 }
  0x1b   : > { %1479 = vmatprep.mubr.msk.f32.mxu1 %vm243_vm0, %v201_v21  ;;  %1623 = vmatpush3.bf16.msra.mxu1 %v1620_v29  ;;  %v208_v39 = vld [vmem:[%s1876_s13 + $0x48] sm:$0xff]  ;;  %v209_v43 = vld [vmem:[%s1876_s13 + $0x50] sm:$0xff]  ;;  %v210_v44 = vld [vmem:[%s1876_s13 + $0x58] sm:$0xff] }
  0x1c   : > { %1625 = vmatprep.subr.bf16.mxu1 %v1624_v30  ;;  %v211_v46 = vld [vmem:[%s1876_s13 + $0x60] sm:$0xff]  ;;  %v212_v47 = vld [vmem:[%s1876_s13 + $0x68] sm:$0xff]  ;;  %v213_v48 = vld [vmem:[%s1876_s13 + $0x70] sm:$0xff]  ;;  %p1696_p12 = pnand %p1695_p11, %p1825_p5  ;;  %p1703_p2 = por %p1702_p1, %p1701_p0 }
  0x1d   : > { %1314 = vmatmul.mubr.msk.f32.gmra.mrb[2].mxu0 %vm243_vm0, %v200_v20  ;;  %v214_v49 = vld [vmem:[%s1876_s13 + $0x78] sm:$0xff]  ;;  %v215_v50 = vld [vmem:[%s1876_s13 + $0x80] sm:$0xff]  ;;  %v216_v51 = vld [vmem:[%s1876_s13 + $0x88] sm:$0xff] }
  0x1e   : > { %416 = vmatprep.mubr.f32.mxu0 %v1758_v7  ;;  %1480 = vmatmul.mubr.msk.f32.gmra.mrb[2].mxu1 %vm243_vm0, %v202_v22  ;;  %v217_v52 = vld [vmem:[%s1876_s13 + $0x90] sm:$0xff]  ;;  %v218_v53 = vld [vmem:[%s1876_s13 + $0x98] sm:$0xff]  ;;  %v219_v54 = vld [vmem:[%s1876_s13 + $0xa0] sm:$0xff]  ;;  %p1697_p13 = pneg %p1696_p12 }
  0x1f   : > { %1482 = vmatprep.mubr.msk.f32.mxu1 %vm243_vm0, %v203_v23  ;;  %1627 = vmatpush3.bf16.msra.mxu1 %v1624_v30  ;;  %v220_v55 = vld [vmem:[%s1876_s13 + $0xa8] sm:$0xff]  ;;  %v221_v56 = vld [vmem:[%s1876_s13 + $0xb0] sm:$0xff]  ;;  %v222_v57 = vld [vmem:[%s1876_s13 + $0xb8] sm:$0xff] }
  0x20   : > { %1629 = vmatprep.subr.bf16.mxu1 %v1628_v35  ;;  %v223_v58 = vld [vmem:[%s1876_s13 + $0xc0] sm:$0xff]  ;;  %v224_v59 = vld [vmem:[%s1876_s13 + $0xc8] sm:$0xff]  ;;  %v225_v60 = vld [vmem:[%s1876_s13 + $0xd0] sm:$0xff]  ;;  %p1704_p3 = pnand %p1703_p2, %p1697_p13 }
  0x21   : > { %1315 = vmatmul.mubr.msk.f32.gmra.mrb[4].mxu0 %vm243_vm0, %v201_v21  ;;  %v226_v61 = vld [vmem:[%s1876_s13 + $0xd8] sm:$0xff]  ;;  %v227_v62 = vld [vmem:[%s1876_s13 + $0xe0] sm:$0xff]  ;;  %v228_v63 = vld [vmem:[%s1876_s13 + $0xe8] sm:$0xff] }
  0x22   : > { %422 = vmatprep.mubr.f32.mxu0 %v1758_v7  ;;  %1483 = vmatmul.mubr.msk.f32.gmra.mrb[4].mxu1 %vm243_vm0, %v204_v24  ;;  %v229_v0 = vld [vmem:[%s1876_s13 + $0xf0] sm:$0xff]  ;;  %v230_v1 = vld [vmem:[%s1876_s13 + $0xf8] sm:$0xff]  ;;  %s1383_s13 = sshll.u32 %s1808_s19, 12  ;;  %s2195_s19 = scalar_lea.sflag [#allocation3], %s189_s12 }
  0x23   : > { %1485 = vmatprep.mubr.msk.f32.mxu1 %vm243_vm0, %v205_v33  ;;  %1631 = vmatpush3.bf16.msra.mxu1 %v1628_v35  ;;  %s2186_s29 = scalar_lea.hbm %s2240_s4, %s1383_s13 }
  0x24   : > { %1633 = vmatprep.subr.bf16.mxu1 %v1632_v40 }
  0x25   : > { %1316 = vmatmul.mubr.msk.f32.gmra.mrb[6].mxu0 %vm243_vm0, %v202_v22 }
  0x26   : > { %428 = vmatprep.mubr.f32.mxu0 %v1758_v7  ;;  %1486 = vmatmul.mubr.msk.f32.gmra.mrb[6].mxu1 %vm243_vm0, %v206_v34 }
  0x27   : > { %1488 = vmatprep.mubr.msk.f32.mxu1 %vm243_vm0, %v207_v38  ;;  %1635 = vmatpush3.bf16.msra.mxu1 %v1632_v40 }
  0x28   : > { %1637 = vmatprep.subr.bf16.mxu1 %v1636_v45 }
  0x29   : > { %1317 = vmatmul.mubr.msk.f32.gmra.mrb[8].mxu0 %vm243_vm0, %v203_v23 }
  0x2a   : > { %434 = vmatprep.mubr.f32.mxu0 %v1758_v7  ;;  %1489 = vmatmul.mubr.msk.f32.gmra.mrb[8].mxu1 %vm243_vm0, %v208_v39 }
  0x2b   : > { %1491 = vmatprep.mubr.msk.f32.mxu1 %vm243_vm0, %v209_v43  ;;  %1639 = vmatpush3.bf16.msra.mxu1 %v1636_v45 }
  0x2c   : > { %1641 = vmatprep.subr.bf16.mxu1 %v1640_v4 }
  0x2d   : > { %1318 = vmatmul.mubr.msk.f32.gmra.mrb[10].mxu0 %vm243_vm0, %v204_v24 }
  0x2e   : > { %440 = vmatprep.mubr.f32.mxu0 %v1758_v7  ;;  %1492 = vmatmul.mubr.msk.f32.gmra.mrb[10].mxu1 %vm243_vm0, %v210_v44 }
  0x2f   : > { %1494 = vmatprep.mubr.msk.f32.mxu1 %vm243_vm0, %v211_v46  ;;  %1643 = vmatpush3.bf16.msra.mxu1 %v1640_v4 }
  0x30   : > { %1645 = vmatprep.subr.bf16.mxu1 %v1644_v8 }
  0x31   : > { %1319 = vmatmul.mubr.msk.f32.gmra.mrb[12].mxu0 %vm243_vm0, %v205_v33 }
  0x32   : > { %446 = vmatprep.mubr.f32.mxu0 %v1758_v7  ;;  %1495 = vmatmul.mubr.msk.f32.gmra.mrb[12].mxu1 %vm243_vm0, %v212_v47 }
  0x33   : > { %1497 = vmatprep.mubr.msk.f32.mxu1 %vm243_vm0, %v213_v48  ;;  %1647 = vmatpush3.bf16.msra.mxu1 %v1644_v8 }
  0x34   : > { %1649 = vmatprep.subr.bf16.mxu1 %v1648_v11 }
  0x35   : > { %1320 = vmatmul.mubr.msk.f32.gmra.mrb[14].mxu0 %vm243_vm0, %v206_v34 }
  0x36   : > { %452 = vmatprep.mubr.f32.mxu0 %v1758_v7  ;;  %1498 = vmatmul.mubr.msk.f32.gmra.mrb[14].mxu1 %vm243_vm0, %v214_v49 }
  0x37   : > { %1500 = vmatprep.mubr.msk.f32.mxu1 %vm243_vm0, %v215_v50  ;;  %1651 = vmatpush3.bf16.msra.mxu1 %v1648_v11 }
  0x39   : > { %1321 = vmatmul.mubr.msk.f32.gmra.mrb[16].mxu0 %vm243_vm0, %v207_v38 }
  0x3a   : > { %458 = vmatprep.mubr.f32.mxu0 %v1758_v7  ;;  %1501 = vmatmul.mubr.msk.f32.gmra.mrb[16].mxu1 %vm243_vm0, %v216_v51 }
  0x3b   : > { %1503 = vmatprep.mubr.msk.f32.mxu1 %vm243_vm0, %v217_v52 }
  0x3d   : > { %1322 = vmatmul.mubr.msk.f32.gmra.mrb[18].mxu0 %vm243_vm0, %v208_v39 }
  0x3e   : > { %464 = vmatprep.mubr.f32.mxu0 %v1758_v7  ;;  %1504 = vmatmul.mubr.msk.f32.gmra.mrb[18].mxu1 %vm243_vm0, %v218_v53 }
  0x3f   : > { %1506 = vmatprep.mubr.msk.f32.mxu1 %vm243_vm0, %v219_v54 }
  0x41   : > { %1323 = vmatmul.mubr.msk.f32.gmra.mrb[20].mxu0 %vm243_vm0, %v209_v43 }
  0x42   : > { %470 = vmatprep.mubr.f32.mxu0 %v1758_v7  ;;  %1507 = vmatmul.mubr.msk.f32.gmra.mrb[20].mxu1 %vm243_vm0, %v220_v55 }
  0x43   : > { %1509 = vmatprep.mubr.msk.f32.mxu1 %vm243_vm0, %v221_v56 }
  0x45   : > { %1324 = vmatmul.mubr.msk.f32.gmra.mrb[22].mxu0 %vm243_vm0, %v210_v44 }
  0x46   : > { %476 = vmatprep.mubr.f32.mxu0 %v1758_v7  ;;  %1510 = vmatmul.mubr.msk.f32.gmra.mrb[22].mxu1 %vm243_vm0, %v222_v57 }
  0x47   : > { %1512 = vmatprep.mubr.msk.f32.mxu1 %vm243_vm0, %v223_v58 }
  0x49   : > { %1325 = vmatmul.mubr.msk.f32.gmra.mrb[24].mxu0 %vm243_vm0, %v211_v46 }
  0x4a   : > { %482 = vmatprep.mubr.f32.mxu0 %v1758_v7  ;;  %1513 = vmatmul.mubr.msk.f32.gmra.mrb[24].mxu1 %vm243_vm0, %v224_v59 }
  0x4b   : > { %1515 = vmatprep.mubr.msk.f32.mxu1 %vm243_vm0, %v225_v60 }
  0x4d   : > { %1326 = vmatmul.mubr.msk.f32.gmra.mrb[26].mxu0 %vm243_vm0, %v212_v47 }
  0x4e   : > { %488 = vmatprep.mubr.f32.mxu0 %v1758_v7  ;;  %1516 = vmatmul.mubr.msk.f32.gmra.mrb[26].mxu1 %vm243_vm0, %v226_v61 }
  0x4f   : > { %1518 = vmatprep.mubr.msk.f32.mxu1 %vm243_vm0, %v227_v62 }
  0x51   : > { %1327 = vmatmul.mubr.msk.f32.gmra.mrb[28].mxu0 %vm243_vm0, %v213_v48 }
  0x52   : > { %494 = vmatprep.mubr.f32.mxu0 %v1758_v7  ;;  %1519 = vmatmul.mubr.msk.f32.gmra.mrb[28].mxu1 %vm243_vm0, %v228_v63 }
  0x53   : > { %1521 = vmatprep.mubr.msk.f32.mxu1 %vm243_vm0, %v229_v0 }
  0x55   : > { %1328 = vmatmul.mubr.msk.f32.gmra.mrb[30].mxu0 %vm243_vm0, %v214_v49 }
  0x56   : > { %500 = vmatprep.mubr.f32.mxu0 %v1758_v7  ;;  %1522 = vmatmul.mubr.msk.f32.gmra.mrb[30].mxu1 %vm243_vm0, %v230_v1 }
  0x59   : > { %1329 = vmatmul.mubr.msk.f32.gmra.mrb[32].mxu0 %vm243_vm0, %v215_v50 }
  0x5a   : > { %506 = vmatprep.mubr.f32.mxu0 %v1758_v7 }
  0x5d   : > { %1330 = vmatmul.mubr.msk.f32.gmra.mrb[34].mxu0 %vm243_vm0, %v216_v51 }
  0x5e   : > { %512 = vmatprep.mubr.f32.mxu0 %v1758_v7 }
  0x61   : > { %1331 = vmatmul.mubr.msk.f32.gmra.mrb[36].mxu0 %vm243_vm0, %v217_v52 }
  0x62   : > { %518 = vmatprep.mubr.f32.mxu0 %v1758_v7 }
  0x65   : > { %1332 = vmatmul.mubr.msk.f32.gmra.mrb[38].mxu0 %vm243_vm0, %v218_v53 }
  0x66   : > { %524 = vmatprep.mubr.f32.mxu0 %v1758_v7 }
  0x69   : > { %1333 = vmatmul.mubr.msk.f32.gmra.mrb[40].mxu0 %vm243_vm0, %v219_v54 }
  0x6a   : > { %530 = vmatprep.mubr.f32.mxu0 %v1758_v7 }
  0x6d   : > { %1334 = vmatmul.mubr.msk.f32.gmra.mrb[42].mxu0 %vm243_vm0, %v220_v55 }
  0x6e   : > { %536 = vmatprep.mubr.f32.mxu0 %v1758_v7 }
  0x71   : > { %1335 = vmatmul.mubr.msk.f32.gmra.mrb[44].mxu0 %vm243_vm0, %v221_v56 }
  0x72   : > { %542 = vmatprep.mubr.f32.mxu0 %v1758_v7 }
  0x75   : > { %1336 = vmatmul.mubr.msk.f32.gmra.mrb[46].mxu0 %vm243_vm0, %v222_v57 }
  0x76   : > { %548 = vmatprep.mubr.f32.mxu0 %v1758_v7 }
  0x79   : > { %1337 = vmatmul.mubr.msk.f32.gmra.mrb[48].mxu0 %vm243_vm0, %v223_v58 }
  0x7a   : > { %554 = vmatprep.mubr.f32.mxu0 %v1758_v7 }
  0x7d   : > { %1338 = vmatmul.mubr.msk.f32.gmra.mrb[50].mxu0 %vm243_vm0, %v224_v59 }
  0x7e   : > { %560 = vmatprep.mubr.f32.mxu0 %v1758_v7 }
  0x81   : > { %1339 = vmatmul.mubr.msk.f32.gmra.mrb[52].mxu0 %vm243_vm0, %v225_v60 }
  0x82   : > { %566 = vmatprep.mubr.f32.mxu0 %v1758_v7 }
  0x85   : > { %1340 = vmatmul.mubr.msk.f32.gmra.mrb[54].mxu0 %vm243_vm0, %v226_v61 }
  0x86   : > { %572 = vmatprep.mubr.f32.mxu0 %v1758_v7 }
  0x89   : > { %1341 = vmatmul.mubr.msk.f32.gmra.mrb[56].mxu0 %vm243_vm0, %v227_v62 }
  0x8a   : > { %578 = vmatprep.mubr.f32.mxu0 %v1758_v7 }
  0x8d   : > { %1342 = vmatmul.mubr.msk.f32.gmra.mrb[58].mxu0 %vm243_vm0, %v228_v63 }
  0x8e   : > { %584 = vmatprep.mubr.f32.mxu0 %v1758_v7 }
  0x91   : > { %1343 = vmatmul.mubr.msk.f32.gmra.mrb[60].mxu0 %vm243_vm0, %v229_v0 }
  0x92   : > { %590 = vmatprep.mubr.f32.mxu0 %v1758_v7 }
  0x95   : > { %1344 = vmatmul.mubr.msk.f32.gmra.mrb[62].mxu0 %vm243_vm0, %v230_v1 }
  0xec   : > { %v406_v12 = vpop.f32.mrb[0].mxu0 }
  0xed   : > { %v408_v13 = vpop.f32.mrb[1].mxu0  ;;  %v1478_v15 = vpop.f32.mrb[0].mxu1 }
  0xee   : > { %v822_v14 = vmul.f32 %v408_v13, %v406_v12  ;;  %v663_v16 = vpop.f32.mrb[1].mxu1 }
  0xf0   : > { %v412_v17 = vpop.f32.mrb[2].mxu0  ;;  %v854_v18 = vadd.f32 %v822_v14, %v406_v12 }
  0xf1   : > { %v414_v19 = vpop.f32.mrb[3].mxu0  ;;  %v1481_v22 = vpop.f32.mrb[2].mxu1 }
  0xf2   : > { %v823_v20 = vmul.f32 %v414_v19, %v412_v17  ;;  %v886_v21 = vmul.f32 %v854_v18, %v663_v16  ;;  %v673_v23 = vpop.f32.mrb[3].mxu1 }
  0xf4   : > { %v855_v24 = vadd.f32 %v823_v20, %v412_v17  ;;  %v918_v25 = vadd.f32 %v886_v21, %v854_v18  ;;  %v418_v26 = vpop.f32.mrb[4].mxu0 }
  0xf5   : > { %v420_v27 = vpop.f32.mrb[5].mxu0  ;;  %v1484_v29 = vpop.f32.mrb[4].mxu1 }
  0xf6   : > { %v887_v28 = vmul.f32 %v1478_v15, %v855_v24  ;;  %v824_v7 = vmul.f32 %v420_v27, %v418_v26  ;;  %1556 = vmatprep.mubr.f32.mxu1 %v918_v25  ;;  %v683_v30 = vpop.f32.mrb[5].mxu1 }
  0xf8   : > { %v919_v31 = vadd.f32 %v887_v28, %v855_v24  ;;  %v424_v32 = vpop.f32.mrb[6].mxu0  ;;  %v856_v33 = vadd.f32 %v824_v7, %v418_v26 }
  0xf9   : > { %v426_v34 = vpop.f32.mrb[7].mxu0  ;;  %v1487_v37 = vpop.f32.mrb[6].mxu1 }
  0xfa   : > { %v825_v35 = vmul.f32 %v426_v34, %v424_v32  ;;  %v888_v36 = vmul.f32 %v856_v33, %v673_v23  ;;  %1557 = vmatmul.mubr.f32.vlgmr.msra.gmra.mrb[32].mxu1 %v919_v31  ;;  %v693_v38 = vpop.f32.mrb[7].mxu1 }
  0xfc   : > { %v857_v39 = vadd.f32 %v825_v35, %v424_v32  ;;  %v920_v40 = vadd.f32 %v888_v36, %v856_v33  ;;  %v430_v41 = vpop.f32.mrb[8].mxu0 }
  0xfd   : > { %v432_v42 = vpop.f32.mrb[9].mxu0  ;;  %v1490_v45 = vpop.f32.mrb[8].mxu1 }
  0xfe   : > { %v889_v43 = vmul.f32 %v1481_v22, %v857_v39  ;;  %v826_v44 = vmul.f32 %v432_v42, %v430_v41  ;;  %1559 = vmatprep.mubr.f32.mxu1 %v920_v40  ;;  %v703_v46 = vpop.f32.mrb[9].mxu1 }
 0x100   : > { %v436_v47 = vpop.f32.mrb[10].mxu0  ;;  %v858_v48 = vadd.f32 %v826_v44, %v430_v41  ;;  %v921_v49 = vadd.f32 %v889_v43, %v857_v39 }
 0x101   : > { %v438_v50 = vpop.f32.mrb[11].mxu0  ;;  %v1493_v53 = vpop.f32.mrb[10].mxu1 }
 0x102   : > { %v827_v51 = vmul.f32 %v438_v50, %v436_v47  ;;  %v890_v52 = vmul.f32 %v858_v48, %v683_v30  ;;  %1560 = vmatmul.mubr.f32.gmra.mrb[34].mxu1 %v921_v49  ;;  %v713_v54 = vpop.f32.mrb[11].mxu1 }
 0x104   : > { %v859_v55 = vadd.f32 %v827_v51, %v436_v47  ;;  %v922_v56 = vadd.f32 %v890_v52, %v858_v48  ;;  %v442_v57 = vpop.f32.mrb[12].mxu0 }
 0x105   : > { %v444_v58 = vpop.f32.mrb[13].mxu0  ;;  %v2053_v61 = vpop.f32.mrb[12].mxu1 }
 0x106   : > { %v891_v59 = vmul.f32 %v1484_v29, %v859_v55  ;;  %v828_v60 = vmul.f32 %v444_v58, %v442_v57  ;;  %1562 = vmatprep.mubr.f32.mxu1 %v922_v56  ;;  %v723_v62 = vpop.f32.mrb[13].mxu1 }
 0x108   : > { %v448_v63 = vpop.f32.mrb[14].mxu0  ;;  %v860_v0 = vadd.f32 %v828_v60, %v442_v57  ;;  %v923_v1 = vadd.f32 %v891_v59, %v859_v55 }
 0x109   : > { %v450_v2 = vpop.f32.mrb[15].mxu0  ;;  %v2055_v5 = vpop.f32.mrb[14].mxu1 }
 0x10a   : > { %v829_v3 = vmul.f32 %v450_v2, %v448_v63  ;;  %v892_v4 = vmul.f32 %v860_v0, %v693_v38  ;;  %1563 = vmatmul.mubr.f32.gmra.mrb[36].mxu1 %v923_v1  ;;  %v2057_v6 = vpop.f32.mrb[15].mxu1 }
 0x10c   : > { %v861_v8 = vadd.f32 %v829_v3, %v448_v63  ;;  %v924_v9 = vadd.f32 %v892_v4, %v860_v0  ;;  %v454_v10 = vpop.f32.mrb[16].mxu0 }
 0x10d   : > { %v456_v11 = vpop.f32.mrb[17].mxu0  ;;  %v2059_v14 = vpop.f32.mrb[16].mxu1 }
 0x10e   : > { %v893_v12 = vmul.f32 %v1487_v37, %v861_v8  ;;  %v830_v13 = vmul.f32 %v456_v11, %v454_v10  ;;  %1565 = vmatprep.mubr.f32.mxu1 %v924_v9  ;;  %v2061_v15 = vpop.f32.mrb[17].mxu1 }
 0x110   : > { %v460_v16 = vpop.f32.mrb[18].mxu0  ;;  %v862_v17 = vadd.f32 %v830_v13, %v454_v10  ;;  %v925_v18 = vadd.f32 %v893_v12, %v861_v8 }
 0x111   : > { %v462_v19 = vpop.f32.mrb[19].mxu0  ;;  %v2063_v22 = vpop.f32.mrb[18].mxu1 }
 0x112   : > { %v831_v20 = vmul.f32 %v462_v19, %v460_v16  ;;  %v894_v21 = vmul.f32 %v862_v17, %v703_v46  ;;  %1566 = vmatmul.mubr.f32.gmra.mrb[38].mxu1 %v925_v18  ;;  %v2065_v23 = vpop.f32.mrb[19].mxu1 }
 0x114   : > { %v863_v24 = vadd.f32 %v831_v20, %v460_v16  ;;  %v926_v25 = vadd.f32 %v894_v21, %v862_v17  ;;  %v466_v26 = vpop.f32.mrb[20].mxu0 }
 0x115   : > { %v468_v27 = vpop.f32.mrb[21].mxu0  ;;  %v2067_v29 = vpop.f32.mrb[20].mxu1 }
 0x116   : > { %v895_v28 = vmul.f32 %v1490_v45, %v863_v24  ;;  %v832_v7 = vmul.f32 %v468_v27, %v466_v26  ;;  %1568 = vmatprep.mubr.f32.mxu1 %v926_v25  ;;  %v2069_v30 = vpop.f32.mrb[21].mxu1 }
 0x118   : > { %v472_v31 = vpop.f32.mrb[22].mxu0  ;;  %v864_v32 = vadd.f32 %v832_v7, %v466_v26  ;;  %v927_v33 = vadd.f32 %v895_v28, %v863_v24 }
 0x119   : > { %v474_v34 = vpop.f32.mrb[23].mxu0  ;;  %v2071_v37 = vpop.f32.mrb[22].mxu1 }
 0x11a   : > { %v833_v35 = vmul.f32 %v474_v34, %v472_v31  ;;  %v896_v36 = vmul.f32 %v864_v32, %v713_v54  ;;  %1569 = vmatmul.mubr.f32.gmra.mrb[40].mxu1 %v927_v33  ;;  %v2073_v38 = vpop.f32.mrb[23].mxu1 }
 0x11c   : > { %v865_v39 = vadd.f32 %v833_v35, %v472_v31  ;;  %v928_v40 = vadd.f32 %v896_v36, %v864_v32  ;;  %v478_v41 = vpop.f32.mrb[24].mxu0 }
 0x11d   : > { %v480_v42 = vpop.f32.mrb[25].mxu0  ;;  %v2075_v45 = vpop.f32.mrb[24].mxu1 }
 0x11e   : > { %v897_v43 = vmul.f32 %v1493_v53, %v865_v39  ;;  %v834_v44 = vmul.f32 %v480_v42, %v478_v41  ;;  %1571 = vmatprep.mubr.f32.mxu1 %v928_v40  ;;  %v2077_v46 = vpop.f32.mrb[25].mxu1 }
 0x120   : > { %v484_v47 = vpop.f32.mrb[26].mxu0  ;;  %v866_v48 = vadd.f32 %v834_v44, %v478_v41  ;;  %v929_v49 = vadd.f32 %v897_v43, %v865_v39 }
 0x121   : > { %v486_v50 = vpop.f32.mrb[27].mxu0  ;;  %v2079_v54 = vpop.f32.mrb[26].mxu1 }
 0x122   : > { %v835_v51 = vmul.f32 %v486_v50, %v484_v47  ;;  %v898_v52 = vmul.f32 %v866_v48, %v723_v62  ;;  %1572 = vmatmul.mubr.f32.gmra.mrb[42].mxu1 %v929_v49  ;;  %v2081_v55 = vpop.f32.mrb[27].mxu1 }
 0x124   : > { %v867_v56 = vadd.f32 %v835_v51, %v484_v47  ;;  %v930_v57 = vadd.f32 %v898_v52, %v866_v48  ;;  %v490_v53 = vpop.f32.mrb[28].mxu0 }
 0x125   : > { %v492_v58 = vpop.f32.mrb[29].mxu0  ;;  %v2084_v63 = vpop.f32.mrb[28].mxu1 }
 0x126   : > { %v899_v59 = vmul.f32 %v2053_v61, %v867_v56  ;;  %v836_v60 = vmul.f32 %v492_v58, %v490_v53  ;;  %1574 = vmatprep.mubr.f32.mxu1 %v930_v57  ;;  %v2086_v0 = vpop.f32.mrb[29].mxu1 }
 0x128   : > { %v496_v1 = vpop.f32.mrb[30].mxu0  ;;  %v868_v2 = vadd.f32 %v836_v60, %v490_v53  ;;  %v931_v62 = vadd.f32 %v899_v59, %v867_v56 }
 0x129   : > { %v498_v3 = vpop.f32.mrb[31].mxu0  ;;  %v2089_v9 = vpop.f32.mrb[30].mxu1 }
 0x12a   : > { %v837_v4 = vmul.f32 %v498_v3, %v496_v1  ;;  %v900_v8 = vmul.f32 %v868_v2, %v2057_v6  ;;  %1575 = vmatmul.mubr.f32.gmra.mrb[44].mxu1 %v931_v62  ;;  %v2091_v10 = vpop.f32.mrb[31].mxu1 }
 0x12c   : > { %v869_v11 = vadd.f32 %v837_v4, %v496_v1  ;;  %v932_v61 = vadd.f32 %v900_v8, %v868_v2  ;;  %v502_v12 = vpop.f32.mrb[32].mxu0 }
 0x12d   : > { %v504_v13 = vpop.f32.mrb[33].mxu0 }
 0x12e   : > { %v901_v16 = vmul.f32 %v2055_v5, %v869_v11  ;;  %v838_v17 = vmul.f32 %v504_v13, %v502_v12  ;;  %1577 = vmatprep.mubr.f32.mxu1 %v932_v61 }
 0x130   : > { %v508_v18 = vpop.f32.mrb[34].mxu0  ;;  %v870_v19 = vadd.f32 %v838_v17, %v502_v12  ;;  %v933_v20 = vadd.f32 %v901_v16, %v869_v11 }
 0x131   : > { %v510_v21 = vpop.f32.mrb[35].mxu0 }
 0x132   : > { %v839_v24 = vmul.f32 %v510_v21, %v508_v18  ;;  %v902_v6 = vmul.f32 %v870_v19, %v2061_v15  ;;  %1578 = vmatmul.mubr.f32.gmra.mrb[46].mxu1 %v933_v20 }
 0x134   : > { %v871_v25 = vadd.f32 %v839_v24, %v508_v18  ;;  %v934_v26 = vadd.f32 %v902_v6, %v870_v19  ;;  %v514_v27 = vpop.f32.mrb[36].mxu0 }
 0x135   : > { %v516_v28 = vpop.f32.mrb[37].mxu0 }
 0x136   : > { %v903_v7 = vmul.f32 %v2059_v14, %v871_v25  ;;  %v840_v31 = vmul.f32 %v516_v28, %v514_v27  ;;  %1580 = vmatprep.mubr.f32.mxu1 %v934_v26 }
 0x138   : > { %v520_v32 = vpop.f32.mrb[38].mxu0  ;;  %v872_v5 = vadd.f32 %v840_v31, %v514_v27  ;;  %v935_v33 = vadd.f32 %v903_v7, %v871_v25 }
 0x139   : > { %v522_v34 = vpop.f32.mrb[39].mxu0 }
 0x13a   : > { %v841_v35 = vmul.f32 %v522_v34, %v520_v32  ;;  %v904_v36 = vmul.f32 %v872_v5, %v2065_v23  ;;  %1581 = vmatmul.mubr.f32.gmra.mrb[48].mxu1 %v935_v33 }
 0x13c   : > { %v873_v39 = vadd.f32 %v841_v35, %v520_v32  ;;  %v936_v40 = vadd.f32 %v904_v36, %v872_v5  ;;  %v526_v15 = vpop.f32.mrb[40].mxu0 }
 0x13d   : > { %v528_v41 = vpop.f32.mrb[41].mxu0 }
 0x13e   : > { %v905_v42 = vmul.f32 %v2063_v22, %v873_v39  ;;  %v842_v43 = vmul.f32 %v528_v41, %v526_v15  ;;  %1583 = vmatprep.mubr.f32.mxu1 %v936_v40 }
 0x140   : > { %v532_v44 = vpop.f32.mrb[42].mxu0  ;;  %v874_v14 = vadd.f32 %v842_v43, %v526_v15  ;;  %v937_v47 = vadd.f32 %v905_v42, %v873_v39 }
 0x141   : > { %v534_v48 = vpop.f32.mrb[43].mxu0 }
 0x142   : > { %v843_v49 = vmul.f32 %v534_v48, %v532_v44  ;;  %v906_v50 = vmul.f32 %v874_v14, %v2069_v30  ;;  %1584 = vmatmul.mubr.f32.gmra.mrb[50].mxu1 %v937_v47 }
 0x144   : > { %v875_v51 = vadd.f32 %v843_v49, %v532_v44  ;;  %v938_v52 = vadd.f32 %v906_v50, %v874_v14  ;;  %v538_v23 = vpop.f32.mrb[44].mxu0 }
 0x145   : > { %v540_v56 = vpop.f32.mrb[45].mxu0 }
 0x146   : > { %v907_v57 = vmul.f32 %v2067_v29, %v875_v51  ;;  %v844_v53 = vmul.f32 %v540_v56, %v538_v23  ;;  %1586 = vmatprep.mubr.f32.mxu1 %v938_v52 }
 0x148   : > { %v544_v58 = vpop.f32.mrb[46].mxu0  ;;  %v876_v22 = vadd.f32 %v844_v53, %v538_v23  ;;  %v939_v59 = vadd.f32 %v907_v57, %v875_v51 }
 0x149   : > { %v546_v60 = vpop.f32.mrb[47].mxu0 }
 0x14a   : > { %v845_v1 = vmul.f32 %v546_v60, %v544_v58  ;;  %v908_v2 = vmul.f32 %v876_v22, %v2073_v38  ;;  %1587 = vmatmul.mubr.f32.gmra.mrb[52].mxu1 %v939_v59 }
 0x14c   : > { %v877_v62 = vadd.f32 %v845_v1, %v544_v58  ;;  %v940_v3 = vadd.f32 %v908_v2, %v876_v22  ;;  %v550_v30 = vpop.f32.mrb[48].mxu0 }
 0x14d   : > { %v552_v4 = vpop.f32.mrb[49].mxu0 }
 0x14e   : > { %v909_v8 = vmul.f32 %v2071_v37, %v877_v62  ;;  %v846_v11 = vmul.f32 %v552_v4, %v550_v30  ;;  %1589 = vmatprep.mubr.f32.mxu1 %v940_v3 }
 0x150   : > { %v556_v61 = vpop.f32.mrb[50].mxu0  ;;  %v878_v29 = vadd.f32 %v846_v11, %v550_v30  ;;  %v941_v12 = vadd.f32 %v909_v8, %v877_v62 }
 0x151   : > { %v558_v13 = vpop.f32.mrb[51].mxu0 }
 0x152   : > { %v847_v16 = vmul.f32 %v558_v13, %v556_v61  ;;  %v910_v17 = vmul.f32 %v878_v29, %v2077_v46  ;;  %1590 = vmatmul.mubr.f32.gmra.mrb[54].mxu1 %v941_v12 }
 0x154   : > { %v879_v18 = vadd.f32 %v847_v16, %v556_v61  ;;  %v942_v19 = vadd.f32 %v910_v17, %v878_v29  ;;  %v562_v38 = vpop.f32.mrb[52].mxu0 }
 0x155   : > { %v564_v20 = vpop.f32.mrb[53].mxu0 }
 0x156   : > { %v911_v21 = vmul.f32 %v2075_v45, %v879_v18  ;;  %v848_v24 = vmul.f32 %v564_v20, %v562_v38  ;;  %1592 = vmatprep.mubr.f32.mxu1 %v942_v19 }
 0x158   : > { %v568_v6 = vpop.f32.mrb[54].mxu0  ;;  %v880_v37 = vadd.f32 %v848_v24, %v562_v38  ;;  %v943_v25 = vadd.f32 %v911_v21, %v879_v18 }
 0x159   : > { %v570_v26 = vpop.f32.mrb[55].mxu0 }
 0x15a   : > { %v849_v27 = vmul.f32 %v570_v26, %v568_v6  ;;  %v912_v28 = vmul.f32 %v880_v37, %v2081_v55  ;;  %1593 = vmatmul.mubr.f32.gmra.mrb[56].mxu1 %v943_v25 }
 0x15c   : > { %v881_v7 = vadd.f32 %v849_v27, %v568_v6  ;;  %v944_v31 = vadd.f32 %v912_v28, %v880_v37  ;;  %v574_v46 = vpop.f32.mrb[56].mxu0 }
 0x15d   : > { %v576_v32 = vpop.f32.mrb[57].mxu0 }
 0x15e   : > { %v913_v5 = vmul.f32 %v2079_v54, %v881_v7  ;;  %v850_v33 = vmul.f32 %v576_v32, %v574_v46  ;;  %1595 = vmatprep.mubr.f32.mxu1 %v944_v31 }
 0x160   : > { %v580_v34 = vpop.f32.mrb[58].mxu0  ;;  %v882_v45 = vadd.f32 %v850_v33, %v574_v46  ;;  %v945_v35 = vadd.f32 %v913_v5, %v881_v7 }
 0x161   : > { %v582_v36 = vpop.f32.mrb[59].mxu0 }
 0x162   : > { %v851_v39 = vmul.f32 %v582_v36, %v580_v34  ;;  %v914_v40 = vmul.f32 %v882_v45, %v2086_v0  ;;  %1596 = vmatmul.mubr.f32.gmra.mrb[58].mxu1 %v945_v35 }
 0x164   : > { %v883_v15 = vadd.f32 %v851_v39, %v580_v34  ;;  %v946_v41 = vadd.f32 %v914_v40, %v882_v45  ;;  %v586_v55 = vpop.f32.mrb[60].mxu0 }
 0x165   : > { %v588_v42 = vpop.f32.mrb[61].mxu0 }
 0x166   : > { %v915_v43 = vmul.f32 %v2084_v63, %v883_v15  ;;  %v852_v44 = vmul.f32 %v588_v42, %v586_v55  ;;  %1598 = vmatprep.mubr.f32.mxu1 %v946_v41  ;;  %v2116_v63 = vld [vmem:[%s2239_s3] ss:$0 sm:$0xff] }
 0x168   : > { %v592_v54 = vpop.f32.mrb[62].mxu0  ;;  %v884_v14 = vadd.f32 %v852_v44, %v586_v55  ;;  %v947_v47 = vadd.f32 %v915_v43, %v883_v15 }
 0x169   : > { %v594_v48 = vpop.f32.mrb[63].mxu0 }
 0x16a   : > { %v853_v49 = vmul.f32 %v594_v48, %v592_v54  ;;  %v916_v50 = vmul.f32 %v884_v14, %v2091_v10  ;;  %1599 = vmatmul.mubr.f32.gmra.mrb[60].mxu1 %v947_v47 }
 0x16c   : > { %v885_v0 = vadd.f32 %v853_v49, %v592_v54  ;;  %v948_v51 = vadd.f32 %v916_v50, %v884_v14 }
 0x16e   : > { %v917_v52 = vmul.f32 %v2089_v9, %v885_v0  ;;  %1601 = vmatprep.mubr.f32.mxu1 %v948_v51 }
 0x170   : > { %v949_v23 = vadd.f32 %v917_v52, %v885_v0 }
 0x172   : > { %1602 = vmatmul.mubr.f32.gmra.mrb[62].mxu1 %v949_v23 }
 0x1cd   : > { %v1558_v56 = vpop.f32.mrb[32].mxu1 }
 0x1ce   : > { %v1045_v57 = vadd.f32 %v1558_v56, %v2116_v63  ;;  %v1039_v10 = vpop.f32.mrb[33].mxu1 }
 0x1cf   : > { %v1040_v53 = vadd.f32 %v2116_v63, %v1039_v10 }
 0x1d0   : > { %1199 = vst [vmem:[%s2120_s22 + $0x8] sm:$0xff] %v1045_v57 }
 0x1d1   : > { %1198 = vst [vmem:[%s2120_s22] sm:$0xff] %v1040_v53 }
 0x1d5   : > { %v1561_v9 = vpop.f32.mrb[34].mxu1 }
 0x1d6   : > { %v1055_v58 = vadd.f32 %v1561_v9, %v2116_v63  ;;  %v1049_v22 = vpop.f32.mrb[35].mxu1 }
 0x1d7   : > { %v1050_v59 = vadd.f32 %v2116_v63, %v1049_v22 }
 0x1d8   : > { %1201 = vst [vmem:[%s2120_s22 + $0x18] sm:$0xff] %v1055_v58 }
 0x1d9   : > { %1200 = vst [vmem:[%s2120_s22 + $0x10] sm:$0xff] %v1050_v59 }
 0x1dd   : > { %v1564_v60 = vpop.f32.mrb[36].mxu1 }
 0x1de   : > { %v1065_v1 = vadd.f32 %v1564_v60, %v2116_v63  ;;  %v1059_v2 = vpop.f32.mrb[37].mxu1 }
 0x1df   : > { %v1060_v62 = vadd.f32 %v2116_v63, %v1059_v2 }
 0x1e0   : > { %1203 = vst [vmem:[%s2120_s22 + $0x28] sm:$0xff] %v1065_v1 }
 0x1e1   : > { %1202 = vst [vmem:[%s2120_s22 + $0x20] sm:$0xff] %v1060_v62 }
 0x1e5   : > { %v1567_v3 = vpop.f32.mrb[38].mxu1 }
 0x1e6   : > { %v1075_v30 = vadd.f32 %v1567_v3, %v2116_v63  ;;  %v1069_v4 = vpop.f32.mrb[39].mxu1 }
 0x1e7   : > { %v1070_v8 = vadd.f32 %v2116_v63, %v1069_v4 }
 0x1e8   : > { %1205 = vst [vmem:[%s2120_s22 + $0x38] sm:$0xff] %v1075_v30 }
 0x1e9   : > { %1204 = vst [vmem:[%s2120_s22 + $0x30] sm:$0xff] %v1070_v8 }
 0x1ed   : > { %v1570_v11 = vpop.f32.mrb[40].mxu1 }
 0x1ee   : > { %v1085_v61 = vadd.f32 %v1570_v11, %v2116_v63  ;;  %v1079_v29 = vpop.f32.mrb[41].mxu1 }
 0x1ef   : > { %v1080_v12 = vadd.f32 %v2116_v63, %v1079_v29 }
 0x1f0   : > { %1207 = vst [vmem:[%s2120_s22 + $0x48] sm:$0xff] %v1085_v61 }
 0x1f1   : > { %1206 = vst [vmem:[%s2120_s22 + $0x40] sm:$0xff] %v1080_v12 }
 0x1f5   : > { %v1573_v13 = vpop.f32.mrb[42].mxu1 }
 0x1f6   : > { %v1095_v16 = vadd.f32 %v1573_v13, %v2116_v63  ;;  %v1089_v17 = vpop.f32.mrb[43].mxu1 }
 0x1f7   : > { %v1090_v18 = vadd.f32 %v2116_v63, %v1089_v17 }
 0x1f8   : > { %1209 = vst [vmem:[%s2120_s22 + $0x58] sm:$0xff] %v1095_v16 }
 0x1f9   : > { %1208 = vst [vmem:[%s2120_s22 + $0x50] sm:$0xff] %v1090_v18 }
 0x1fd   : > { %v1576_v19 = vpop.f32.mrb[44].mxu1 }
 0x1fe   : > { %v1105_v38 = vadd.f32 %v1576_v19, %v2116_v63  ;;  %v1099_v20 = vpop.f32.mrb[45].mxu1 }
 0x1ff   : > { %v1100_v21 = vadd.f32 %v2116_v63, %v1099_v20 }
 0x200   : > { %1211 = vst [vmem:[%s2120_s22 + $0x68] sm:$0xff] %v1105_v38 }
 0x201   : > { %1210 = vst [vmem:[%s2120_s22 + $0x60] sm:$0xff] %v1100_v21 }
 0x205   : > { %v1579_v24 = vpop.f32.mrb[46].mxu1 }
 0x206   : > { %v1115_v6 = vadd.f32 %v1579_v24, %v2116_v63  ;;  %v1109_v37 = vpop.f32.mrb[47].mxu1 }
 0x207   : > { %v1110_v25 = vadd.f32 %v2116_v63, %v1109_v37 }
 0x208   : > { %1213 = vst [vmem:[%s2120_s22 + $0x78] sm:$0xff] %v1115_v6 }
 0x209   : > { %1212 = vst [vmem:[%s2120_s22 + $0x70] sm:$0xff] %v1110_v25 }
 0x20d   : > { %v1582_v26 = vpop.f32.mrb[48].mxu1 }
 0x20e   : > { %v1125_v27 = vadd.f32 %v1582_v26, %v2116_v63  ;;  %v1119_v28 = vpop.f32.mrb[49].mxu1 }
 0x20f   : > { %v1120_v7 = vadd.f32 %v2116_v63, %v1119_v28 }
 0x210   : > { %1215 = vst [vmem:[%s2120_s22 + $0x88] sm:$0xff] %v1125_v27 }
 0x211   : > { %1214 = vst [vmem:[%s2120_s22 + $0x80] sm:$0xff] %v1120_v7 }
 0x215   : > { %v1585_v31 = vpop.f32.mrb[50].mxu1 }
 0x216   : > { %v1135_v46 = vadd.f32 %v1585_v31, %v2116_v63  ;;  %v1129_v32 = vpop.f32.mrb[51].mxu1 }
 0x217   : > { %v1130_v5 = vadd.f32 %v2116_v63, %v1129_v32 }
 0x218   : > { %1217 = vst [vmem:[%s2120_s22 + $0x98] sm:$0xff] %v1135_v46 }
 0x219   : > { %1216 = vst [vmem:[%s2120_s22 + $0x90] sm:$0xff] %v1130_v5 }
 0x21d   : > { %v1588_v33 = vpop.f32.mrb[52].mxu1 }
 0x21e   : > { %v1145_v34 = vadd.f32 %v1588_v33, %v2116_v63  ;;  %v1139_v45 = vpop.f32.mrb[53].mxu1 }
 0x21f   : > { %v1140_v35 = vadd.f32 %v2116_v63, %v1139_v45 }
 0x220   : > { %1219 = vst [vmem:[%s2120_s22 + $0xa8] sm:$0xff] %v1145_v34 }
 0x221   : > { %1218 = vst [vmem:[%s2120_s22 + $0xa0] sm:$0xff] %v1140_v35 }
 0x225   : > { %v1591_v36 = vpop.f32.mrb[54].mxu1 }
 0x226   : > { %v1155_v39 = vadd.f32 %v1591_v36, %v2116_v63  ;;  %v1149_v40 = vpop.f32.mrb[55].mxu1 }
 0x227   : > { %v1150_v15 = vadd.f32 %v2116_v63, %v1149_v40 }
 0x228   : > { %1221 = vst [vmem:[%s2120_s22 + $0xb8] sm:$0xff] %v1155_v39 }
 0x229   : > { %1220 = vst [vmem:[%s2120_s22 + $0xb0] sm:$0xff] %v1150_v15 }
 0x22d   : > { %v1594_v41 = vpop.f32.mrb[56].mxu1 }
 0x22e   : > { %v1165_v55 = vadd.f32 %v1594_v41, %v2116_v63  ;;  %v1159_v42 = vpop.f32.mrb[57].mxu1 }
 0x22f   : > { %v1160_v43 = vadd.f32 %v2116_v63, %v1159_v42 }
 0x230   : > { %1223 = vst [vmem:[%s2120_s22 + $0xc8] sm:$0xff] %v1165_v55 }
 0x231   : > { %1222 = vst [vmem:[%s2120_s22 + $0xc0] sm:$0xff] %v1160_v43 }
 0x235   : > { %v1597_v44 = vpop.f32.mrb[58].mxu1 }
 0x236   : > { %v1175_v54 = vadd.f32 %v1597_v44, %v2116_v63  ;;  %v1169_v14 = vpop.f32.mrb[59].mxu1 }
 0x237   : > { %v1170_v47 = vadd.f32 %v2116_v63, %v1169_v14 }
 0x238   : > { %1225 = vst [vmem:[%s2120_s22 + $0xd8] sm:$0xff] %v1175_v54 }
 0x239   : > { %1224 = vst [vmem:[%s2120_s22 + $0xd0] sm:$0xff] %v1170_v47 }
 0x23d   : > { %v1600_v48 = vpop.f32.mrb[60].mxu1 }
 0x23e   : > { %v1185_v49 = vadd.f32 %v1600_v48, %v2116_v63  ;;  %v1179_v50 = vpop.f32.mrb[61].mxu1 }
 0x23f   : > { %v1180_v0 = vadd.f32 %v2116_v63, %v1179_v50 }
 0x240   : > { %1227 = vst [vmem:[%s2120_s22 + $0xe8] sm:$0xff] %v1185_v49 }
 0x241   : > { %1226 = vst [vmem:[%s2120_s22 + $0xe0] sm:$0xff] %v1180_v0 }
 0x245   : > { %v1603_v51 = vpop.f32.mrb[62].mxu1 }
 0x246   : > { %v1195_v52 = vadd.f32 %v1603_v51, %v2116_v63  ;;  %v1189_v23 = vpop.f32.mrb[63].mxu1 }
 0x247   : > { %v1190_v56 = vadd.f32 %v2116_v63, %v1189_v23 }
 0x248   : > { %1229 = vst [vmem:[%s2120_s22 + $0xf8] sm:$0xff] %v1195_v52 }
 0x249   : > { %1228 = vst [vmem:[%s2120_s22 + $0xf0] sm:$0xff] %v1190_v56 }
 0x24a   : > { %1707 = shalt.err (!%p1704_p3)
}
 0x24b   : > { %s1708_s9 = scalar_lea.hbm %s2186_s29, 4096  ;;  %s1712_s12 = scalar_lea.hbm %s2240_s4, 8192 }
 0x24c   : > { %p1709_p4 = scmp.ne.s32.totalorder %s2186_s29, %s1708_s9  ;;  %p1713_p9 = scmp.lt.u32.totalorder %s2186_s29, %s2240_s4 }
 0x24d   : > { %p1714_p10 = scmp.lt.u32.totalorder %s1712_s12, %s1708_s9  ;;  %p1716_p12 = scmp.lt.u32.totalorder %s1708_s9, %s2186_s29 }
 0x24e   : > { %p1710_p7 = pnand %p1709_p4, %p1825_p5 }
 0x24f   : > { %p1715_p11 = por %p1714_p10, %p1713_p9 }
 0x250   : > { %p1711_p8 = pneg %p1710_p7 }
 0x251   : > { %p1717_p13 = por %p1716_p12, %p1715_p11 }
 0x253   : > { %p1718_p0 = pnand %p1717_p13, %p1711_p8 }
 0x255   : > { %1721 = shalt.err (!%p1718_p0)
}
 0x256   : > { %s1760_s20 = smov 128   ;;  %s1761_s22 = smov 8  }
 0x257   : > { %1652 = dma.vmem_to_hbm [thread:$0]  (%p1825_p5), %s2188_s23, 4096, %s2186_s29, %s2195_s19, %s1760_s20, %s1760_s20, %s1761_s22  }
 0x258 PF: > { %p1658_p1 = scmp.ge.s32.totalorder %s1756_s18, 2  ;;  %s1259_s13 = sand.u32 1, %s1744_s15  }
 0x259   : > { %s1260_s27 = scalar_lea.sflag [#allocation3], %s1259_s13 }
 0x25a   : > { %p1655_p2 = pnand %p1658_p1, %p1829_p6 }
 0x25c   : > { %1739 = dma.done.wait (!%p1655_p2), %s1260_s27, 4096  }
 0x25d   : > { %1741 = vsyncadd (!%p1655_p2), %s1260_s27, 4294963200  ;;  %p14_p3 = scmp.ge.s32.totalorder %s1812_s21, 4   ;;  %s2243_s15 = smov %s1748_s16 }
 0x25e   : > { %s2244_s16 = smov %s1752_s17  ;;  %s2245_s17 = smov %s1823_s24 }
 0x25f   : > { %s2246_s18 = smov %s1812_s21  ;;  %16 = sbr.rel (!%p14_p3) target bundleno = 3 (0x3), region = 71 }
 0x266   :  { %1265 = vsyncpa [#allocation3], 1 }
 0x267   :  { %1267 = vsyncpa [#allocation3 + $0x1], 1 }

</bundles_post_ra>
